<compile_context>
chip_gen: v7x
topology: tpu7x:2x2x1
jax: 0.10.0
libtpu: 0.0.40
codegen_flags: <defaults>
</compile_context>

<pallas_src>
import functools

import jax
import jax.numpy as jnp
from jax import lax
from jax.experimental import pallas as pl
from jax.experimental.pallas import tpu as pltpu


def _splat_tile(x_ref, g_ref, Ho, Wo):
    """Bilinear dct2-splat contribution of one pixel tile. Returns (C*Ho, Wo) float32."""
    C = x_ref.shape[1]
    TN = x_ref.shape[2]

    g = g_ref[0].astype(jnp.float32)          # (2, TN) lane-dense coordinate rows
    gy = g[0:1, :]                            # (1, TN) coord along rows (H)
    gx = g[1:2, :]                            # (1, TN) coord along cols (W)

    y0f = jnp.floor(gy)
    x0f = jnp.floor(gx)
    wy1 = gy - y0f
    wy0 = 1.0 - wy1
    wx1 = gx - x0f
    wx0 = 1.0 - wx1

    def fold(i, n):
        # 'dct2' (reflect / Neumann) boundary: half-sample symmetric, sign = +1.
        # (float mod loses precision only for |coord| approaching 2**23 in f32;
        #  harmless for realistic deformation grids.)
        p = float(2 * n)
        m = i - jnp.floor(i / p) * p          # float mod into [0, p)
        m = jnp.where(m >= float(n), p - 1.0 - m, m)
        return m.astype(jnp.int32)

    y0 = fold(y0f, Ho)
    y1 = fold(y0f + 1.0, Ho)
    x0 = fold(x0f, Wo)
    x1 = fold(x0f + 1.0, Wo)

    # Thin weighted one-hots built directly in (out, pixel) layout: pixels stay on
    # lanes throughout, no matrix transpose needed.
    iy = lax.broadcasted_iota(jnp.int32, (Ho, TN), 0)
    ix = lax.broadcasted_iota(jnp.int32, (Wo, TN), 0)
    ayT = jnp.where(iy == y0, wy0, 0.0) + jnp.where(iy == y1, wy1, 0.0)   # (Ho, TN)
    axT = jnp.where(ix == x0, wx0, 0.0) + jnp.where(ix == x1, wx1, 0.0)   # (Wo, TN)

    xv = x_ref[0].astype(jnp.float32)                                     # (C, TN)

    # Fused channel stack: b[(c*Ho + h), p] = ayT[h, p] * x[c, p] -> single MXU matmul
    # with M = C*Ho (instead of C separate M = Ho matmuls).
    b_stack = (xv[:, None, :] * ayT[None, :, :]).reshape(C * Ho, TN)

    # Contract over pixels; rhs passed in (Wo, TN) so no explicit transpose is emitted.
    # TODO(synk): optionally cast operands to bf16 on v6e/v7x when tolerance allows.
    return lax.dot_general(
        b_stack, axT,
        dimension_numbers=(((1,), (1,)), ((), ())),
        preferred_element_type=jnp.float32)                                # (C*Ho, Wo)


def _grid_push_kernel(x_ref, g_ref, out_ref, *scratch, Ho, Wo):
    """Splat one tile of input pixels of one batch element into the output block."""
    acc_ref = scratch[0] if scratch else None
    t = pl.program_id(1)

    contrib = _splat_tile(x_ref, g_ref, Ho, Wo)

    if acc_ref is None:
        # float32 output: accumulate directly into the resident output block.
        @pl.when(t == 0)
        def _():
            out_ref[0] = jnp.zeros_like(out_ref[0])

        out_ref[0] = out_ref[0] + contrib
    else:
        @pl.when(t == 0)
        def _():
            acc_ref[...] = jnp.zeros_like(acc_ref)

        acc_ref[...] = acc_ref[...] + contrib

        @pl.when(t == pl.num_programs(1) - 1)
        def _():
            out_ref[0] = acc_ref[...].astype(out_ref.dtype)


def _round_up(a, m):
    return ((a + m - 1) // m) * m


def grid_push(x, grid, shape=None, *, interpolation='linear', bound='dct2',
              extrapolate=True, tile=None):
    """Push/splat an image x:(B,C,H,W) along grid:(B,H,W,2) -> (B,C,Ho,Wo)."""
    if interpolation not in (1, 'linear'):
        raise NotImplementedError("only linear interpolation is implemented")
    if bound not in ('dct2', 'reflect'):
        raise NotImplementedError("only bound='dct2' (reflect) is implemented")
    if not extrapolate:
        raise NotImplementedError("only extrapolate=True is implemented")

    B, C, Hi, Wi = x.shape
    gB, gH, gW, D = grid.shape
    assert D == 2, "this kernel implements the 2-D spatial case"
    assert gB == B and (gH, gW) == (Hi, Wi)
    Ho, Wo = (Hi, Wi) if shape is None else tuple(shape)

    N = Hi * Wi
    if tile is None:
        tile = min(512, _round_up(N, 128))
    tile = _round_up(int(tile), 128)
    N_pad = _round_up(N, tile)
    num_tiles = N_pad // tile

    # Channels on sublanes, pixels on lanes; grid coordinates as lane-dense rows.
    x_flat = x.reshape(B, C, N)
    g_flat = jnp.moveaxis(grid.reshape(B, N, 2), 2, 1)          # (B, 2, N)
    if N_pad != N:
        # Zero-valued pixels splat nothing -> padding is correctness-safe.
        x_flat = jnp.pad(x_flat, ((0, 0), (0, 0), (0, N_pad - N)))
        g_flat = jnp.pad(g_flat, ((0, 0), (0, 0), (0, N_pad - N)))

    use_acc = jnp.dtype(x.dtype) != jnp.dtype(jnp.float32)
    scratch_shapes = [pltpu.VMEM((C * Ho, Wo), jnp.float32)] if use_acc else []

    itemsize = jnp.dtype(x.dtype).itemsize
    out_bytes = C * Ho * Wo * itemsize
    vmem_need = (2 * (C * tile * itemsize + 2 * tile * 4)       # double-buffered inputs
                 + 2 * out_bytes                                # output block
                 + (C * Ho * Wo * 4 if use_acc else 0)          # f32 accumulator
                 + (4 << 20))                                   # headroom
    vmem_limit = int(min(max(vmem_need, 32 << 20), 128 << 20))

    cost = pl.CostEstimate(
        flops=2 * B * C * Ho * Wo * N_pad,
        transcendentals=0,
        bytes_accessed=int(x_flat.size * itemsize + g_flat.size * 4 + B * out_bytes))

    kernel = functools.partial(_grid_push_kernel, Ho=Ho, Wo=Wo)

    out = pl.pallas_call(
        kernel,
        out_shape=jax.ShapeDtypeStruct((B, C * Ho, Wo), x.dtype),
        grid_spec=pltpu.PrefetchScalarGridSpec(
            num_scalar_prefetch=0,
            grid=(B, num_tiles),
            in_specs=[
                pl.BlockSpec((1, C, tile), lambda b, t: (b, 0, t)),
                pl.BlockSpec((1, 2, tile), lambda b, t: (b, 0, t)),
            ],
            out_specs=pl.BlockSpec((1, C * Ho, Wo), lambda b, t: (b, 0, 0)),
            scratch_shapes=scratch_shapes,
        ),
        compiler_params=pltpu.CompilerParams(
            dimension_semantics=("parallel", "arbitrary"),
            vmem_limit_bytes=vmem_limit),
        cost_estimate=cost,
    )(x_flat, g_flat)

    return out.reshape(B, C, Ho, Wo)


class GridPush:
    """Functional stand-in for nitorch.nn.modules.spatial.GridPush (no parameters)."""

    def __init__(self, shape=None, interpolation='linear', bound='dct2', extrapolate=True):
        self.shape = shape
        self.interpolation = interpolation
        self.bound = bound
        self.extrapolate = extrapolate

    def __call__(self, x, grid, **overload):
        return grid_push(
            x, grid,
            overload.get('shape', self.shape),
            interpolation=overload.get('interpolation', self.interpolation),
            bound=overload.get('bound', self.bound),
            extrapolate=overload.get('extrapolate', self.extrapolate))


def _grid_push_ref(x, grid, Ho, Wo):
    """Pure-JAX reference (scatter-add) for validation."""
    B, C, Hi, Wi = x.shape
    N = Hi * Wi
    xf = x.reshape(B, C, N).astype(jnp.float32)
    g = grid.reshape(B, N, 2).astype(jnp.float32)
    gy, gx = g[..., 0], g[..., 1]
    y0f = jnp.floor(gy)
    x0f = jnp.floor(gx)
    wy1 = gy - y0f
    wy0 = 1.0 - wy1
    wx1 = gx - x0f
    wx0 = 1.0 - wx1

    def fold(i, n):
        p = float(2 * n)
        m = i - jnp.floor(i / p) * p
        m = jnp.where(m >= float(n), p - 1.0 - m, m)
        return m.astype(jnp.int32)

    y0 = fold(y0f, Ho)
    y1 = fold(y0f + 1.0, Ho)
    x0 = fold(x0f, Wo)
    x1 = fold(x0f + 1.0, Wo)

    flat = jnp.zeros((B, C, Ho * Wo), jnp.float32)

    def splat(flat, yi, xi, w):
        idx = yi * Wo + xi                    # (B, N)
        vals = xf * w[:, None, :]             # (B, C, N)
        per_chan = lambda o, i, v: o.at[i].add(v)
        per_batch = jax.vmap(per_chan, in_axes=(0, None, 0))
        return jax.vmap(per_batch, in_axes=(0, 0, 0))(flat, idx, vals)

    flat = splat(flat, y0, x0, wy0 * wx0)
    flat = splat(flat, y0, x1, wy0 * wx1)
    flat = splat(flat, y1, x0, wy1 * wx0)
    flat = splat(flat, y1, x1, wy1 * wx1)
    return flat.reshape(B, C, Ho, Wo).astype(x.dtype)


if __name__ == "__main__":
    key = jax.random.PRNGKey(0)
    B, C, H, W = 2, 4, 16, 16
    kx, kg = jax.random.split(key)

    x = jax.random.normal(kx, (B, C, H, W), dtype=jnp.float32)
    yy, xx = jnp.meshgrid(jnp.arange(H, dtype=jnp.float32),
                          jnp.arange(W, dtype=jnp.float32), indexing='ij')
    ident = jnp.stack([yy, xx], axis=-1)                       # (H, W, 2)
    disp = 1.5 * jax.random.normal(kg, (B, H, W, 2), dtype=jnp.float32)
    grid = ident[None] + disp                                  # (B, H, W, 2)

    pushed = GridPush()(x, grid)
    pushed = jax.block_until_ready(pushed)

    assert pushed.shape == (B, C, H, W)
    assert jnp.all(jnp.isfinite(pushed))

    ref = _grid_push_ref(x, grid, H, W)
    err = jnp.max(jnp.abs(pushed - ref))
    assert err < 1e-3, f"max abs err vs reference: {err}"

    print("KERNEL_OK")
</pallas_src>

<mosaic_0001>
module attributes {stable_mosaic.version = 11 : i64} {
  func.func @_grid_push_kernel(%arg0: i32, %arg1: i32, %arg2: memref<1x4x256xf32, #tpu.memory_space<vmem>>, %arg3: memref<1x2x256xf32, #tpu.memory_space<vmem>>, %arg4: memref<1x64x16xf32, #tpu.memory_space<vmem>>) attributes {dimension_semantics = [#tpu.dimension_semantics<parallel>, #tpu.dimension_semantics<arbitrary>], iteration_bounds = array<i64: 2, 1>, scalar_prefetch = 0 : i64, scratch_operands = 0 : i64, tpu.core_type = #tpu.core_type<tc>, window_params = [{transform_indices = @transform_0, window_bounds = array<i64: 1, 4, 256>}, {transform_indices = @transform_1, window_bounds = array<i64: 1, 2, 256>}, {transform_indices = @transform_2, window_bounds = array<i64: 1, 64, 16>}]} {
    %c0 = arith.constant 0 : index
    %c0_0 = arith.constant 0 : index
    %c0_1 = arith.constant 0 : index
    %0 = vector.load %arg3[%c0, %c0_0, %c0_1] : memref<1x2x256xf32, #tpu.memory_space<vmem>>, vector<1x2x256xf32>
    %1 = vector.shape_cast %0 : vector<1x2x256xf32> to vector<2x256xf32>
    %2 = vector.extract_strided_slice %1 {offsets = [0, 0], sizes = [1, 256], strides = [1, 1]} : vector<2x256xf32> to vector<1x256xf32>
    %3 = vector.extract_strided_slice %1 {offsets = [1, 0], sizes = [1, 256], strides = [1, 1]} : vector<2x256xf32> to vector<1x256xf32>
    %4 = math.floor %2 : vector<1x256xf32>
    %5 = math.floor %3 : vector<1x256xf32>
    %6 = arith.subf %2, %4 : vector<1x256xf32>
    %cst = arith.constant 1.000000e+00 : f32
    %7 = vector.broadcast %cst : f32 to vector<1x256xf32>
    %8 = arith.subf %7, %6 : vector<1x256xf32>
    %9 = arith.subf %3, %5 : vector<1x256xf32>
    %cst_2 = arith.constant 1.000000e+00 : f32
    %10 = vector.broadcast %cst_2 : f32 to vector<1x256xf32>
    %11 = arith.subf %10, %9 : vector<1x256xf32>
    %cst_3 = arith.constant 3.200000e+01 : f32
    %12 = vector.broadcast %cst_3 : f32 to vector<1x256xf32>
    %13 = arith.divf %4, %12 : vector<1x256xf32>
    %14 = math.floor %13 : vector<1x256xf32>
    %cst_4 = arith.constant 3.200000e+01 : f32
    %15 = vector.broadcast %cst_4 : f32 to vector<1x256xf32>
    %16 = arith.mulf %14, %15 : vector<1x256xf32>
    %17 = arith.subf %4, %16 : vector<1x256xf32>
    %cst_5 = arith.constant 1.600000e+01 : f32
    %18 = vector.broadcast %cst_5 : f32 to vector<1x256xf32>
    %19 = arith.cmpf oge, %17, %18 : vector<1x256xf32>
    %cst_6 = arith.constant 3.100000e+01 : f32
    %20 = vector.broadcast %cst_6 : f32 to vector<1x256xf32>
    %21 = arith.subf %20, %17 : vector<1x256xf32>
    %22 = arith.select %19, %21, %17 : vector<1x256xi1>, vector<1x256xf32>
    %23 = arith.fptosi %22 : vector<1x256xf32> to vector<1x256xi32>
    %cst_7 = arith.constant 1.000000e+00 : f32
    %24 = vector.broadcast %cst_7 : f32 to vector<1x256xf32>
    %25 = arith.addf %4, %24 : vector<1x256xf32>
    %cst_8 = arith.constant 3.200000e+01 : f32
    %26 = vector.broadcast %cst_8 : f32 to vector<1x256xf32>
    %27 = arith.divf %25, %26 : vector<1x256xf32>
    %28 = math.floor %27 : vector<1x256xf32>
    %cst_9 = arith.constant 3.200000e+01 : f32
    %29 = vector.broadcast %cst_9 : f32 to vector<1x256xf32>
    %30 = arith.mulf %28, %29 : vector<1x256xf32>
    %31 = arith.subf %25, %30 : vector<1x256xf32>
    %cst_10 = arith.constant 1.600000e+01 : f32
    %32 = vector.broadcast %cst_10 : f32 to vector<1x256xf32>
    %33 = arith.cmpf oge, %31, %32 : vector<1x256xf32>
    %cst_11 = arith.constant 3.100000e+01 : f32
    %34 = vector.broadcast %cst_11 : f32 to vector<1x256xf32>
    %35 = arith.subf %34, %31 : vector<1x256xf32>
    %36 = arith.select %33, %35, %31 : vector<1x256xi1>, vector<1x256xf32>
    %37 = arith.fptosi %36 : vector<1x256xf32> to vector<1x256xi32>
    %cst_12 = arith.constant 3.200000e+01 : f32
    %38 = vector.broadcast %cst_12 : f32 to vector<1x256xf32>
    %39 = arith.divf %5, %38 : vector<1x256xf32>
    %40 = math.floor %39 : vector<1x256xf32>
    %cst_13 = arith.constant 3.200000e+01 : f32
    %41 = vector.broadcast %cst_13 : f32 to vector<1x256xf32>
    %42 = arith.mulf %40, %41 : vector<1x256xf32>
    %43 = arith.subf %5, %42 : vector<1x256xf32>
    %cst_14 = arith.constant 1.600000e+01 : f32
    %44 = vector.broadcast %cst_14 : f32 to vector<1x256xf32>
    %45 = arith.cmpf oge, %43, %44 : vector<1x256xf32>
    %cst_15 = arith.constant 3.100000e+01 : f32
    %46 = vector.broadcast %cst_15 : f32 to vector<1x256xf32>
    %47 = arith.subf %46, %43 : vector<1x256xf32>
    %48 = arith.select %45, %47, %43 : vector<1x256xi1>, vector<1x256xf32>
    %49 = arith.fptosi %48 : vector<1x256xf32> to vector<1x256xi32>
    %cst_16 = arith.constant 1.000000e+00 : f32
    %50 = vector.broadcast %cst_16 : f32 to vector<1x256xf32>
    %51 = arith.addf %5, %50 : vector<1x256xf32>
    %cst_17 = arith.constant 3.200000e+01 : f32
    %52 = vector.broadcast %cst_17 : f32 to vector<1x256xf32>
    %53 = arith.divf %51, %52 : vector<1x256xf32>
    %54 = math.floor %53 : vector<1x256xf32>
    %cst_18 = arith.constant 3.200000e+01 : f32
    %55 = vector.broadcast %cst_18 : f32 to vector<1x256xf32>
    %56 = arith.mulf %54, %55 : vector<1x256xf32>
    %57 = arith.subf %51, %56 : vector<1x256xf32>
    %cst_19 = arith.constant 1.600000e+01 : f32
    %58 = vector.broadcast %cst_19 : f32 to vector<1x256xf32>
    %59 = arith.cmpf oge, %57, %58 : vector<1x256xf32>
    %cst_20 = arith.constant 3.100000e+01 : f32
    %60 = vector.broadcast %cst_20 : f32 to vector<1x256xf32>
    %61 = arith.subf %60, %57 : vector<1x256xf32>
    %62 = arith.select %59, %61, %57 : vector<1x256xi1>, vector<1x256xf32>
    %63 = arith.fptosi %62 : vector<1x256xf32> to vector<1x256xi32>
    %64 = tpu.iota {dimensions = array<i32: 0>} : vector<16x256xi32>
    %65 = tpu.iota {dimensions = array<i32: 0>} : vector<16x256xi32>
    %66 = vector.broadcast %23 : vector<1x256xi32> to vector<16x256xi32>
    %67 = arith.cmpi eq, %64, %66 : vector<16x256xi32>
    %cst_21 = arith.constant 0.000000e+00 : f32
    %68 = vector.shape_cast %8 : vector<1x256xf32> to vector<1x256xf32>
    %69 = vector.broadcast %68 : vector<1x256xf32> to vector<16x256xf32>
    %70 = vector.broadcast %cst_21 : f32 to vector<16x256xf32>
    %71 = arith.select %67, %69, %70 : vector<16x256xi1>, vector<16x256xf32>
    %72 = vector.broadcast %37 : vector<1x256xi32> to vector<16x256xi32>
    %73 = arith.cmpi eq, %64, %72 : vector<16x256xi32>
    %cst_22 = arith.constant 0.000000e+00 : f32
    %74 = vector.shape_cast %6 : vector<1x256xf32> to vector<1x256xf32>
    %75 = vector.broadcast %74 : vector<1x256xf32> to vector<16x256xf32>
    %76 = vector.broadcast %cst_22 : f32 to vector<16x256xf32>
    %77 = arith.select %73, %75, %76 : vector<16x256xi1>, vector<16x256xf32>
    %78 = arith.addf %71, %77 : vector<16x256xf32>
    %79 = vector.broadcast %49 : vector<1x256xi32> to vector<16x256xi32>
    %80 = arith.cmpi eq, %65, %79 : vector<16x256xi32>
    %cst_23 = arith.constant 0.000000e+00 : f32
    %81 = vector.shape_cast %11 : vector<1x256xf32> to vector<1x256xf32>
    %82 = vector.broadcast %81 : vector<1x256xf32> to vector<16x256xf32>
    %83 = vector.broadcast %cst_23 : f32 to vector<16x256xf32>
    %84 = arith.select %80, %82, %83 : vector<16x256xi1>, vector<16x256xf32>
    %85 = vector.broadcast %63 : vector<1x256xi32> to vector<16x256xi32>
    %86 = arith.cmpi eq, %65, %85 : vector<16x256xi32>
    %cst_24 = arith.constant 0.000000e+00 : f32
    %87 = vector.shape_cast %9 : vector<1x256xf32> to vector<1x256xf32>
    %88 = vector.broadcast %87 : vector<1x256xf32> to vector<16x256xf32>
    %89 = vector.broadcast %cst_24 : f32 to vector<16x256xf32>
    %90 = arith.select %86, %88, %89 : vector<16x256xi1>, vector<16x256xf32>
    %91 = arith.addf %84, %90 : vector<16x256xf32>
    %c0_25 = arith.constant 0 : index
    %c0_26 = arith.constant 0 : index
    %c0_27 = arith.constant 0 : index
    %92 = vector.load %arg2[%c0_25, %c0_26, %c0_27] : memref<1x4x256xf32, #tpu.memory_space<vmem>>, vector<1x4x256xf32>
    %93 = vector.shape_cast %92 : vector<1x4x256xf32> to vector<4x256xf32>
    %94 = vector.shape_cast %93 : vector<4x256xf32> to vector<4x1x256xf32>
    %95 = vector.shape_cast %78 : vector<16x256xf32> to vector<1x16x256xf32>
    %96 = vector.broadcast %94 : vector<4x1x256xf32> to vector<4x16x256xf32>
    %97 = vector.broadcast %95 : vector<1x16x256xf32> to vector<4x16x256xf32>
    %98 = arith.mulf %96, %97 : vector<4x16x256xf32>
    %99 = vector.shape_cast %98 : vector<4x16x256xf32> to vector<64x256xf32>
    %cst_28 = arith.constant dense<0.000000e+00> : vector<64x16xf32>
    %100 = tpu.matmul %99, %91, %cst_28 {dimension_numbers = #tpu.dot_dimension_numbers<[1], [1], [0], [0], [0, 0, 1, 0], [], []>} : vector<64x256xf32>, vector<16x256xf32>, vector<64x16xf32> -> vector<64x16xf32>
    %c0_i32 = arith.constant 0 : i32
    %101 = arith.cmpi eq, %arg1, %c0_i32 : i32
    %102 = arith.extui %101 : i1 to i32
    %c0_i32_29 = arith.constant 0 : i32
    %103 = arith.cmpi ne, %102, %c0_i32_29 : i32
    scf.if %103 {
      %cst_36 = arith.constant 0.000000e+00 : f32
      %110 = vector.broadcast %cst_36 : f32 to vector<64x16xf32>
      %c0_37 = arith.constant 0 : index
      %c0_38 = arith.constant 0 : index
      %c0_39 = arith.constant 0 : index
      %111 = vector.load %arg4[%c0_37, %c0_38, %c0_39] : memref<1x64x16xf32, #tpu.memory_space<vmem>>, vector<1x64x16xf32>
      %112 = vector.shape_cast %111 : vector<1x64x16xf32> to vector<64x16xf32>
      %113 = vector.shape_cast %110 : vector<64x16xf32> to vector<1x64x16xf32>
      tpu.vector_store %arg4[%c0_37, %c0_38, %c0_39], %113 {strides = array<i32>} : memref<1x64x16xf32, #tpu.memory_space<vmem>>, vector<1x64x16xf32>,
    } else {
    }
    %c0_30 = arith.constant 0 : index
    %c0_31 = arith.constant 0 : index
    %c0_32 = arith.constant 0 : index
    %104 = vector.load %arg4[%c0_30, %c0_31, %c0_32] : memref<1x64x16xf32, #tpu.memory_space<vmem>>, vector<1x64x16xf32>
    %105 = vector.shape_cast %104 : vector<1x64x16xf32> to vector<64x16xf32>
    %106 = arith.addf %105, %100 : vector<64x16xf32>
    %c0_33 = arith.constant 0 : index
    %c0_34 = arith.constant 0 : index
    %c0_35 = arith.constant 0 : index
    %107 = vector.load %arg4[%c0_33, %c0_34, %c0_35] : memref<1x64x16xf32, #tpu.memory_space<vmem>>, vector<1x64x16xf32>
    %108 = vector.shape_cast %107 : vector<1x64x16xf32> to vector<64x16xf32>
    %109 = vector.shape_cast %106 : vector<64x16xf32> to vector<1x64x16xf32>
    tpu.vector_store %arg4[%c0_33, %c0_34, %c0_35], %109 {strides = array<i32>} : memref<1x64x16xf32, #tpu.memory_space<vmem>>, vector<1x64x16xf32>,
    return
  }
  func.func @transform_0(%arg0: i32, %arg1: i32) -> (i32, i32, i32) {
    %c0_i32 = arith.constant 0 : i32
    %c0_i32_0 = arith.constant 0 : i32
    return %arg0, %c0_i32, %arg1 : i32, i32, i32
  }
  func.func @transform_1(%arg0: i32, %arg1: i32) -> (i32, i32, i32) {
    %c0_i32 = arith.constant 0 : i32
    %c0_i32_0 = arith.constant 0 : i32
    return %arg0, %c0_i32, %arg1 : i32, i32, i32
  }
  func.func @transform_2(%arg0: i32, %arg1: i32) -> (i32, i32, i32) {
    %c0_i32 = arith.constant 0 : i32
    %c0_i32_0 = arith.constant 0 : i32
    %c0_i32_1 = arith.constant 0 : i32
    return %arg0, %c0_i32, %c0_i32_0 : i32, i32, i32
  }
}

</mosaic_0001>

<bundles_post_ra>
// kernel: tpu_custom_call.1
= control target key start
LH: loop header
LB: loop body
LE: loop exit
PB: predicated region body
PF: predicated region fallthrough
CT: control target
= control target key end

     0   :  { %7 = vsyncpa [#allocation3], 0  ;;  %s1288_s0 = inlined_call_operand.hbm [shape: f32[2,4,256], index: 0, kind: input, shape index: {}]   ;;  %s1289_s1 = inlined_call_operand.hbm [shape: f32[2,2,256], index: 1, kind: input, shape index: {}]   ;;  %s1290_s2 = inlined_call_operand.vmem [shape: f32[2,64,16], index: 2, kind: output, shape index: {}]  }
   0x1   :  { %9 = vsyncpa [#allocation3 + $0x1], 0 }
   0x2   :  { %10 = vsyncpa [#allocation5], 0 }
   0x3   :  { %12 = vsyncpa [#allocation5 + $0x1], 0  ;;  %s982_s9 = smov 0   ;;  %s984_s10 = smov 0  }
   0x4   :  { %s986_s11 = smov 0   ;;  %s988_s12 = smov 0  }
   0x5   :  { %s990_s13 = smov 0   ;;  %s992_s14 = smov 0  }
   0x6 LB: > { %s754_s15 = sadd.s32 4294967295, %s961_s14   ;;  %s30_s16 = sadd.s32 1, %s957_s13  ;;  %s961_s14 = sphi %s992_s14, %s18_s14   ;;  %s957_s13 = sphi %s990_s13, %s1304_s13   ;;  %s953_s12 = sphi %s988_s12, %s1303_s12   ;;  %s949_s11 = sphi %s986_s11, %s1302_s11   ;;  %s945_s10 = sphi %s984_s10, %s1301_s10   ;;  %s941_s9 = sphi %s982_s9, %s1300_s9  }
   0x7   : > { %p32_p0 = scmp.ge.s32.totalorder %s30_s16, 2  ;;  %s39_s17 = sadd.s32 1, %s949_s11 }
   0x8   : > { %p46_p1 = scmp.ne.s32.totalorder %s949_s11, %s945_s10  ;;  %p47_p2 = scmp.eq.s32.totalorder %s961_s14, 0 }
   0x9   : > { %s1306_s16 = smov (%p32_p0, %s30_s16), 0  ;;  %p52_p4 = scmp.ne.s32.totalorder %s945_s10, %s941_s9 }
   0xa   : > { %p1018_p3 = por %p47_p2, %p46_p1  ;;  %s34_s19 = ssub.s32 %s957_s13, %s1306_s16 }
   0xb   : > { %p53_p5 = scmp.eq.s32.totalorder %s754_s15, 0  ;;  %p37_p6 = scmp.eq.s32.totalorder %s34_s19, 0 }
   0xc   : > { %p796_p8 = scmp.lt.s32.totalorder %s961_s14, 2  ;;  %s1034_s22 = sand.u32 1, %s949_s11  }
   0xd   : > { %p1025_p7 = por %p53_p5, %p52_p4  ;;  %s772_s23 = sshll.u32 %s957_s13, 7 }
   0xe   : > { %s1031_s21 = scalar_select %p37_p6, %s949_s11, %s39_s17  }
   0xf   : > { %s1293_s20 = scalar_select %p1025_p7, 1, 0 }
  0x10   : > { %s758_s24 = sshll.u32 %s1034_s22, 3  ;;  %s1041_s27 = scalar_lea.hbm %s1288_s0, %s772_s23 }
  0x11   : > { %s134_s28 = scalar_lea.vmem [#allocation2], %s758_s24  ;;  %p1045_p9 = pnand %p796_p8, %p1018_p3 }
  0x12   : > { %s144_s29 = sshll.u32 %s134_s28, 4  ;;  %s131_s3 = scalar_lea.sflag [#allocation3], %s1034_s22  ;;  %s1049_s29 = int_to_ptr.vmem [resolvable:$true] %s144_s29 }
  0x13   : > { %s847_s4 = scalar_lea.hbm %s1041_s27, 128  ;;  %p849_p13 = pneg %p1045_p9 }
  0x14   : > { %p848_p12 = scmp.ne.s32.totalorder %s1041_s27, %s847_s4  ;;  %s852_s7 = scalar_lea.hbm %s1288_s0, 256 }
  0x15   : > { %p853_p2 = scmp.lt.u32.totalorder %s1041_s27, %s1288_s0  ;;  %p854_p3 = scmp.lt.u32.totalorder %s852_s7, %s847_s4 }
  0x16   : > { %p850_p0 = pnand %p849_p13, %p848_p12  ;;  %p856_p5 = scmp.lt.u32.totalorder %s847_s4, %s1041_s27 }
  0x17   : > { %p855_p4 = por %p854_p3, %p853_p2 }
  0x18   : > { %p851_p1 = pneg %p850_p0 }
  0x19   : > { %p857_p6 = por %p856_p5, %p855_p4 }
  0x1b   : > { %p858_p8 = pnand %p857_p6, %p851_p1 }
  0x1d   : > { %861 = shalt.err (!%p858_p8)
}
  0x1e   : > { %s862_s15 = scalar_lea.vmem %s1049_s29, 128  ;;  %s963_s17 = smov [#allocation2]  }
  0x1f   : > { %p863_p12 = scmp.ne.s32.totalorder %s1049_s29, %s862_s15  ;;  %s867_s18 = sshll.u32 %s963_s17, 4  ;;  %s868_s18 = int_to_ptr.vmem [resolvable:$false] %s867_s18 }
  0x20   : > { %s869_s19 = scalar_lea.vmem %s868_s18, 256  ;;  %p870_p11 = scmp.lt.s32.totalorder %s1049_s29, %s868_s18 }
  0x21   : > { %p865_p0 = pnand %p863_p12, %p849_p13  ;;  %p871_p2 = scmp.lt.s32.totalorder %s869_s19, %s862_s15 }
  0x23   : > { %p866_p10 = pneg %p865_p0  ;;  %p872_p3 = por %p871_p2, %p870_p11 }
  0x25   : > { %p873_p4 = pnand %p872_p3, %p866_p10 }
  0x27   : > { %876 = shalt.err (!%p873_p4)
}
  0x28   : > { %792 = dma.hbm_to_vmem [thread:$0]  (!%p1045_p9), %s1041_s27, 128, %s1049_s29, %s131_s3  }
  0x29   : > { %p1295_p1 = scmp.lt.s32.totalorder %s961_s14, 3  ;;  %p1296_p5 = scmp.ge.s32.totalorder %s961_s14, 1 }
  0x2a   : > { %s761_s24 = sshll.u32 %s1034_s22, 2  ;;  %s773_s25 = sshll.u32 %s957_s13, 6 }
  0x2b   : > { %p1083_p6 = pnand %p1296_p5, %p1295_p1  ;;  %s1092_s4 = scalar_lea.hbm %s1289_s1, %s773_s25 }
  0x2c   : > { %s155_s5 = scalar_lea.vmem [#allocation4], %s761_s24  ;;  %s152_s27 = scalar_lea.sflag [#allocation5], %s1034_s22 }
  0x2d   : > { %s1297_s23 = scalar_select %p1083_p6, 1, 0 }
  0x2e   : > { %s165_s6 = sshll.u32 %s155_s5, 4  ;;  %s877_s29 = scalar_lea.hbm %s1092_s4, 64  ;;  %s166_s6 = int_to_ptr.vmem [resolvable:$true] %s165_s6 }
  0x2f   : > { %p878_p10 = scmp.ne.s32.totalorder %s1092_s4, %s877_s29  ;;  %s882_s8 = scalar_lea.hbm %s1289_s1, 128 }
  0x30   : > { %p883_p12 = scmp.lt.u32.totalorder %s1092_s4, %s1289_s1  ;;  %p884_p0 = scmp.lt.u32.totalorder %s882_s8, %s877_s29 }
  0x31   : > { %p880_p11 = pnand %p878_p10, %p849_p13  ;;  %p886_p3 = scmp.lt.u32.totalorder %s877_s29, %s1092_s4 }
  0x32   : > { %p885_p2 = por %p884_p0, %p883_p12 }
  0x33   : > { %p881_p8 = pneg %p880_p11 }
  0x34   : > { %p887_p4 = por %p886_p3, %p885_p2 }
  0x36   : > { %p888_p1 = pnand %p887_p4, %p881_p8 }
  0x38   : > { %891 = shalt.err (!%p888_p1)
}
  0x39   : > { %s892_s22 = scalar_lea.vmem %s166_s6, 64  ;;  %s964_s17 = smov [#allocation4]  }
  0x3a   : > { %p893_p5 = scmp.ne.s32.totalorder %s166_s6, %s892_s22  ;;  %s897_s18 = sshll.u32 %s964_s17, 4  ;;  %s898_s18 = int_to_ptr.vmem [resolvable:$false] %s897_s18 }
  0x3b   : > { %s899_s19 = scalar_lea.vmem %s898_s18, 128  ;;  %p900_p7 = scmp.lt.s32.totalorder %s166_s6, %s898_s18 }
  0x3c   : > { %p895_p10 = pnand %p893_p5, %p849_p13  ;;  %p901_p6 = scmp.lt.s32.totalorder %s899_s19, %s892_s22 }
  0x3e   : > { %p896_p11 = pneg %p895_p10  ;;  %p902_p0 = por %p901_p6, %p900_p7 }
  0x40   : > { %p903_p12 = pnand %p902_p0, %p896_p11 }
  0x42   : > { %906 = shalt.err (!%p903_p12)
}
  0x43   : > { %795 = dma.hbm_to_vmem [thread:$0]  (!%p1045_p9), %s1092_s4, 64, %s166_s6, %s152_s27  }
  0x44   : > { %p1298_p8 = scmp.ne.s32.totalorder %s1297_s23, 0 }
  0x45   : > { %s176_s24 = sand.u32 (!%p1298_p8), 1, %s945_s10   ;;  %p1299_p13 = scmp.ne.s32.totalorder (!%p1298_p8), %s1293_s20, 0 }
  0x46   : > { %174 = sbr.rel (%p1298_p8) target bundleno = 347 (0x15b), region = 28  ;;  %s765_s25 = sshll.u32 (!%p1298_p8), %s176_s24, 3 }
  0x47   : > { %s177_s26 = scalar_lea.sflag (!%p1298_p8), [#allocation3], %s176_s24  ;;  %s180_s28 = scalar_lea.vmem (!%p1298_p8), [#allocation2], %s765_s25 }
  0x4d   : > { %932 = dma.done.wait (%p1299_p13), %s177_s26, 128  }
  0x4e   : > { %934 = vsyncadd (%p1299_p13), %s177_s26, 4294967168  ;;  %s766_s5 = sshll.u32 %s176_s24, 2  ;;  %s186_s29 = scalar_lea.sflag [#allocation5], %s176_s24 }
  0x4f   : > { %s189_s30 = scalar_lea.vmem [#allocation4], %s766_s5 }
  0x50   : > { %936 = dma.done.wait (%p1299_p13), %s186_s29, 64  }
  0x51   : > { %938 = vsyncadd (%p1299_p13), %s186_s29, 4294967232  ;;  %v965_v0 = vmov 1966171168   ;;  %v244_v2 = vlaneseq  ;;  %v222_v4 = vld [vmem:[%s189_s30] sm:$0xf]  ;;  %p217_p7 = scmp.lt.s32.totalorder %s953_s12, 1 }
  0x52   : > { %v436_v1 = vunpack.c.l.s4 %v965_v0  ;;  %v223_v6 = vfloor.f32 %v222_v4  ;;  %v769_v10 = vld.sshfl [vmem:[%s180_s28] sm:$0xff pattern:$0x75316420] }
  0x53   : > { %v1125_v5 = vshrl.u32 %v244_v2, 7  ;;  %v434_v26 = vcombine.high %v769_v10, %v769_v10  ;;  %s1308_s12 = smov (!%p217_p7, %s953_s12), 1 }
  0x54   : > { %v437_v3 = vunpack.c.0.s8 %v436_v1  ;;  %v227_v8 = vmul.f32 0.03125, %v223_v6  ;;  %v235_v9 = vadd.f32 1.0, %v223_v6  ;;  %v224_v11 = vsub.f32 %v222_v4, %v223_v6  ;;  %s774_s20 = sshll.u32 %s1308_s12, 6 }
  0x55   : > { %v343_v14 = vsub.s32 3, %v1125_v5  ;;  %v1130_v18 = vsub.s32 1, %v1125_v5  ;;  %v1133_v20 = vsub.s32 0, %v1125_v5  ;;  %v1136_v21 = vsub.s32 2, %v1125_v5  ;;  %s1228_s6 = scalar_lea.vmem %s1290_s2, %s774_s20 }
  0x56   : > { %v440_v7 = vsub.s32 %v437_v3, %v1125_v5  ;;  %v228_v12 = vfloor.f32 %v227_v8  ;;  %v236_v13 = vmul.f32 0.03125, %v235_v9  ;;  %v225_v19 = vsub.f32 1.0, %v224_v11 }
  0x57   : > { %v1139_v24 = vadd.s32 8, %v1125_v5  ;;  %v406_v25 = vrot.slane %v224_v11, %v343_v14  ;;  %v402_v30 = vrot.slane %v224_v11, %v1130_v18  ;;  %v318_v33 = vrot.slane %v224_v11, %v1136_v21 }
  0x58   : > { %v441_v15 = vrot.slane %v769_v10, %v440_v7  ;;  %v229_v16 = vmul.f32 32.0, %v228_v12  ;;  %v237_v17 = vfloor.f32 %v236_v13  ;;  %v364_v31 = vrot.slane %v225_v19, %v343_v14 }
  0x59   : > { %v360_v32 = vrot.slane %v225_v19, %v1130_v18  ;;  %v314_v34 = vrot.slane %v224_v11, %v1133_v20  ;;  %v275_v37 = vrot.slane %v225_v19, %v1136_v21  ;;  %v1152_v41 = vrot.slane %v434_v26, %v440_v7 }
  0x5a   : > { %v230_v22 = vsub.f32 %v223_v6, %v229_v16  ;;  %v238_v23 = vmul.f32 32.0, %v237_v17  ;;  %v449_v27 = vcombine.high %v441_v15, %v441_v15  ;;  %v1147_v39 = vrot.slane %v441_v15, %v1130_v18 }
  0x5b   : > { %v1150_v40 = vrot.slane %v441_v15, %v1133_v20  ;;  %v416_v43 = vrot.slane %v406_v25, %v1130_v18  ;;  %v271_v45 = vrot.slane %v225_v19, %v1133_v20  ;;  %v412_v48 = vrot.slane %v402_v30, %v1130_v18 }
  0x5c   : > { %vm231_vm0 = vcmp.ge.f32.partialorder %v230_v22, 16.0  ;;  %v232_v28 = vsub.f32 31.0, %v230_v22  ;;  %v239_v29 = vsub.f32 %v235_v9, %v238_v23  ;;  %v1156_v44 = vrot.slane %v449_v27, %v1130_v18 }
  0x5d   : > { %v328_v49 = vrot.slane %v318_v33, %v1133_v20  ;;  %v374_v50 = vrot.slane %v364_v31, %v1130_v18  ;;  %v370_v51 = vrot.slane %v360_v32, %v1130_v18  ;;  %v285_v52 = vrot.slane %v275_v37, %v1133_v20 }
  0x5e   : > { %v233_v35 = vsel %vm231_vm0, %v232_v28, %v230_v22  ;;  %vm240_vm1 = vcmp.ge.f32.partialorder %v239_v29, 16.0  ;;  %v241_v36 = vsub.f32 31.0, %v239_v29  ;;  %v1165_v53 = vrot.slane %v314_v34, %v1133_v20 }
  0x5f   : > { %v781_v38 = vtrunc.f32 %v233_v35  ;;  %v281_v59 = vrot.slane %v271_v45, %v1133_v20  ;;  %v1172_v60 = vrot.slane %v449_v27, %v1133_v20  ;;  %v1176_v61 = vcombine.high %v1152_v41, %v1152_v41 }
  0x60   : > { %v242_v42 = vsel %vm240_vm1, %v241_v36, %v239_v29 }
  0x61   : > { %v782_v46 = vcvt.f32.s32 %v781_v38  ;;  %v783_v47 = vtrunc.f32 %v242_v42 }
  0x63   : > { %v784_v54 = vcvt.f32.s32 %v783_v47  ;;  %v344_v55 = vrot.slane %v782_v46, %v343_v14  ;;  %v340_v56 = vrot.slane %v782_v46, %v1130_v18  ;;  %v254_v57 = vrot.slane %v782_v46, %v1136_v21 }
  0x64   : > { %v250_v58 = vrot.slane %v782_v46, %v1133_v20 }
  0x65   : > { %v352_v62 = vrot.slane %v344_v55, %v1130_v18  ;;  %v386_v63 = vrot.slane %v784_v54, %v343_v14  ;;  %v348_v0 = vrot.slane %v340_v56, %v1130_v18  ;;  %v382_v1 = vrot.slane %v784_v54, %v1130_v18 }
  0x66   : > { %v262_v2 = vrot.slane %v254_v57, %v1133_v20  ;;  %v297_v3 = vrot.slane %v784_v54, %v1136_v21  ;;  %v258_v4 = vrot.slane %v250_v58, %v1133_v20  ;;  %v293_v6 = vrot.slane %v784_v54, %v1133_v20 }
  0x67   : > { %vm354_vm2 = vcmp.eq.s32.totalorder %v1125_v5, %v352_v62  ;;  %vm356_vm3 = vcmp.eq.s32.totalorder %v1139_v24, %v352_v62  ;;  %v394_v7 = vrot.slane %v386_v63, %v1130_v18  ;;  %vm353_vm4 = vcmp.eq.s32.totalorder %v1125_v5, %v348_v0 }
  0x68   : > { %v376_v8 = vsel %vm354_vm2, %v374_v50, 0.0  ;;  %v378_v9 = vsel %vm356_vm3, %v374_v50, 0.0  ;;  %vm355_vm5 = vcmp.eq.s32.totalorder %v1139_v24, %v348_v0  ;;  %v375_v10 = vsel %vm353_vm4, %v370_v51, 0.0 }
  0x69   : > { %vm396_vm6 = vcmp.eq.s32.totalorder %v1125_v5, %v394_v7  ;;  %vm398_vm7 = vcmp.eq.s32.totalorder %v1139_v24, %v394_v7  ;;  %v377_v11 = vsel %vm355_vm5, %v370_v51, 0.0  ;;  %v390_v12 = vrot.slane %v382_v1, %v1130_v18 }
  0x6a   : > { %v418_v13 = vsel %vm396_vm6, %v416_v43, 0.0  ;;  %v420_v14 = vsel %vm398_vm7, %v416_v43, 0.0  ;;  %vm264_vm8 = vcmp.eq.s32.totalorder %v1125_v5, %v262_v2  ;;  %v305_v15 = vrot.slane %v297_v3, %v1133_v20 }
  0x6b   : > { %v422_v16 = vadd.f32 %v418_v13, %v376_v8  ;;  %v424_v17 = vadd.f32 %v420_v14, %v378_v9  ;;  %vm395_vm9 = vcmp.eq.s32.totalorder %v1125_v5, %v390_v12  ;;  %vm397_vm10 = vcmp.eq.s32.totalorder %v1139_v24, %v390_v12 }
  0x6c   : > { %v417_v19 = vsel %vm395_vm9, %v412_v48, 0.0  ;;  %v419_v21 = vsel %vm397_vm10, %v412_v48, 0.0  ;;  %v287_v22 = vsel %vm264_vm8, %v285_v52, 0.0  ;;  %vm307_vm11 = vcmp.eq.s32.totalorder %v1125_v5, %v305_v15 }
  0x6d   : > { %v775_v23 = vpack.c.bf16 %v424_v17, %v422_v16  ;;  %v421_v25 = vadd.f32 %v417_v19, %v375_v10  ;;  %v423_v26 = vadd.f32 %v419_v21, %v377_v11  ;;  %v330_v27 = vsel %vm307_vm11, %v328_v49, 0.0 }
  0x6e   : > { %v334_v28 = vadd.f32 %v330_v27, %v287_v22  ;;  %vm263_vm12 = vcmp.eq.s32.totalorder %v1125_v5, %v258_v4  ;;  %v301_v29 = vrot.slane %v293_v6, %v1133_v20  ;;  %vm266_vm13 = vcmp.eq.s32.totalorder %v1139_v24, %v262_v2 }
  0x6f   : > { %776 = vmatprep.subr.bf16.mxu0 %v775_v23  ;;  %779 = vmatprep.subr.bf16.mxu1 %v775_v23  ;;  %v777_v30 = vpack.c.bf16 %v423_v26, %v421_v25  ;;  %v286_v31 = vsel %vm263_vm12, %v281_v59, 0.0  ;;  %v289_v32 = vsel %vm266_vm13, %v285_v52, 0.0  ;;  %vm309_vm14 = vcmp.eq.s32.totalorder %v1139_v24, %v305_v15 }
  0x70   : > { %v492_v33 = vmul.f32 %v1147_v39, %v334_v28  ;;  %v500_v34 = vmul.f32 %v1156_v44, %v334_v28  ;;  %vm306_vm15 = vcmp.eq.s32.totalorder %v1125_v5, %v301_v29  ;;  %v332_v35 = vsel %vm309_vm14, %v328_v49, 0.0 }
  0x71   : > { %778 = vmatpush1.bf16.xpose.msra.mxu0 %v777_v30  ;;  %780 = vmatpush1.bf16.xpose.msra.mxu1 %v777_v30  ;;  %v329_v36 = vsel %vm306_vm15, %v1165_v53, 0.0  ;;  %v336_v37 = vadd.f32 %v332_v35, %v289_v32  ;;  %vm265_vm0 = vcmp.eq.s32.totalorder %v1139_v24, %v258_v4  ;;  %vm308_vm1 = vcmp.eq.s32.totalorder %v1139_v24, %v301_v29 }
  0x72   : > { %571 = vmatprep.mubr.f32.mxu0 %v492_v33  ;;  %591 = vmatprep.mubr.f32.mxu1 %v500_v34  ;;  %v333_v38 = vadd.f32 %v329_v36, %v286_v31  ;;  %v288_v42 = vsel %vm265_vm0, %v281_v59, 0.0  ;;  %v331_v43 = vsel %vm308_vm1, %v1165_v53, 0.0  ;;  %v466_v49 = vrot.slane %v1152_v41, %v1130_v18 }
  0x73   : > { %v335_v46 = vadd.f32 %v331_v43, %v288_v42  ;;  %v494_v47 = vmul.f32 %v1147_v39, %v336_v37  ;;  %v502_v48 = vmul.f32 %v1156_v44, %v336_v37  ;;  %v482_v24 = vrot.slane %v1176_v61, %v1130_v18 }
  0x74   : > { %v491_v45 = vmul.f32 %v1150_v40, %v333_v38  ;;  %v499_v5 = vmul.f32 %v1172_v60, %v333_v38  ;;  %v462_v50 = vrot.slane %v1152_v41, %v1133_v20  ;;  %v478_v39 = vrot.slane %v1176_v61, %v1133_v20 }
  0x75   : > { %v493_v51 = vmul.f32 %v1150_v40, %v335_v46  ;;  %v501_v52 = vmul.f32 %v1172_v60, %v335_v46  ;;  %v496_v44 = vmul.f32 %v466_v49, %v334_v28  ;;  %v504_v53 = vmul.f32 %v482_v24, %v334_v28 }
  0x76   : > { %v495_v18 = vmul.f32 %v462_v50, %v333_v38  ;;  %v503_v54 = vmul.f32 %v478_v39, %v333_v38  ;;  %v498_v41 = vmul.f32 %v466_v49, %v336_v37  ;;  %v506_v55 = vmul.f32 %v482_v24, %v336_v37 }
  0x77   : > { %v497_v40 = vmul.f32 %v462_v50, %v335_v46  ;;  %v505_v56 = vmul.f32 %v478_v39, %v335_v46  ;;  %vm616_vm2 = vcmask 130048   ;;  %v966_v20 = vmov 0.0  }
  0x78   : > { %572 = vmatmul.mubr.f32.vlgmr.msra.gmra.mrb[0].mxu0 %v491_v45  ;;  %592 = vmatmul.mubr.f32.vlgmr.msra.gmra.mrb[0].mxu1 %v499_v5  ;;  %617 = vst.msk [vmem:[%s1228_s6] sm:$0xff] %vm616_vm2, %v966_v20  ;;  %618 = vst.msk [vmem:[%s1228_s6 + $0x8] sm:$0xff] %vm616_vm2, %v966_v20 }
  0x79   : > { %576 = vmatprep.mubr.f32.mxu0 %v494_v47  ;;  %596 = vmatprep.mubr.f32.mxu1 %v502_v48  ;;  %619 = vst.msk [vmem:[%s1228_s6 + $0x10] sm:$0xff] %vm616_vm2, %v966_v20  ;;  %620 = vst.msk [vmem:[%s1228_s6 + $0x18] sm:$0xff] %vm616_vm2, %v966_v20 }
  0x7a   : > { %621 = vst.msk [vmem:[%s1228_s6 + $0x20] sm:$0xff] %vm616_vm2, %v966_v20  ;;  %622 = vst.msk [vmem:[%s1228_s6 + $0x28] sm:$0xff] %vm616_vm2, %v966_v20 }
  0x7b   : > { %623 = vst.msk [vmem:[%s1228_s6 + $0x30] sm:$0xff] %vm616_vm2, %v966_v20  ;;  %624 = vst.msk [vmem:[%s1228_s6 + $0x38] sm:$0xff] %vm616_vm2, %v966_v20 }
  0x7c   : > { %577 = vmatmul.mubr.f32.gmra.mrb[2].mxu0 %v493_v51  ;;  %597 = vmatmul.mubr.f32.gmra.mrb[2].mxu1 %v501_v52 }
  0x7d   : > { %581 = vmatprep.mubr.f32.mxu0 %v496_v44  ;;  %601 = vmatprep.mubr.f32.mxu1 %v504_v53 }
  0x7f   : > { %v625_v57 = vld [vmem:[%s1228_s6] sm:$0xff]  ;;  %v626_v1 = vld [vmem:[%s1228_s6 + $0x8] sm:$0xff] }
  0x80   : > { %582 = vmatmul.mubr.f32.gmra.mrb[4].mxu0 %v495_v18  ;;  %602 = vmatmul.mubr.f32.gmra.mrb[4].mxu1 %v503_v54  ;;  %v627_v10 = vld [vmem:[%s1228_s6 + $0x10] sm:$0xff]  ;;  %v628_v19 = vld [vmem:[%s1228_s6 + $0x18] sm:$0xff] }
  0x81   : > { %586 = vmatprep.mubr.f32.mxu0 %v498_v41  ;;  %606 = vmatprep.mubr.f32.mxu1 %v506_v55  ;;  %v629_v58 = vld [vmem:[%s1228_s6 + $0x20] sm:$0xff]  ;;  %v630_v2 = vld [vmem:[%s1228_s6 + $0x28] sm:$0xff] }
  0x82   : > { %v631_v11 = vld [vmem:[%s1228_s6 + $0x30] sm:$0xff]  ;;  %v632_v21 = vld [vmem:[%s1228_s6 + $0x38] sm:$0xff] }
  0x84   : > { %587 = vmatmul.mubr.f32.gmra.mrb[6].mxu0 %v497_v40  ;;  %607 = vmatmul.mubr.f32.gmra.mrb[6].mxu1 %v505_v56 }
 0x14b   : > { %v573_v59 = vpop.f32.mrb[0].mxu0  ;;  %v593_v60 = vpop.f32.mrb[0].mxu1 }
 0x14c   : > { %v633_v61 = vadd.f32 %v625_v57, %v573_v59  ;;  %v637_v62 = vadd.f32 %v629_v58, %v593_v60  ;;  %v575_v63 = vpop.f32.mrb[1].mxu0  ;;  %v595_v0 = vpop.f32.mrb[1].mxu1 }
 0x14e   : > { %642 = vst.msk [vmem:[%s1228_s6] sm:$0xff] %vm616_vm2, %v633_v61  ;;  %646 = vst.msk [vmem:[%s1228_s6 + $0x20] sm:$0xff] %vm616_vm2, %v637_v62 }
 0x14f   : > { %v578_v3 = vpop.f32.mrb[2].mxu0  ;;  %v598_v4 = vpop.f32.mrb[2].mxu1 }
 0x150   : > { %v634_v6 = vadd.f32 %v626_v1, %v578_v3  ;;  %v638_v7 = vadd.f32 %v630_v2, %v598_v4  ;;  %v580_v8 = vpop.f32.mrb[3].mxu0  ;;  %v600_v9 = vpop.f32.mrb[3].mxu1 }
 0x152   : > { %643 = vst.msk [vmem:[%s1228_s6 + $0x8] sm:$0xff] %vm616_vm2, %v634_v6  ;;  %647 = vst.msk [vmem:[%s1228_s6 + $0x28] sm:$0xff] %vm616_vm2, %v638_v7 }
 0x153   : > { %v583_v12 = vpop.f32.mrb[4].mxu0  ;;  %v603_v13 = vpop.f32.mrb[4].mxu1 }
 0x154   : > { %v635_v14 = vadd.f32 %v627_v10, %v583_v12  ;;  %v639_v15 = vadd.f32 %v631_v11, %v603_v13  ;;  %v585_v16 = vpop.f32.mrb[5].mxu0  ;;  %v605_v17 = vpop.f32.mrb[5].mxu1 }
 0x156   : > { %644 = vst.msk [vmem:[%s1228_s6 + $0x10] sm:$0xff] %vm616_vm2, %v635_v14  ;;  %648 = vst.msk [vmem:[%s1228_s6 + $0x30] sm:$0xff] %vm616_vm2, %v639_v15 }
 0x157   : > { %v588_v22 = vpop.f32.mrb[6].mxu0  ;;  %v608_v23 = vpop.f32.mrb[6].mxu1 }
 0x158   : > { %v636_v25 = vadd.f32 %v628_v19, %v588_v22  ;;  %v640_v26 = vadd.f32 %v632_v21, %v608_v23  ;;  %v590_v27 = vpop.f32.mrb[7].mxu0  ;;  %v610_v28 = vpop.f32.mrb[7].mxu1 }
 0x15a   : > { %645 = vst.msk [vmem:[%s1228_s6 + $0x18] sm:$0xff] %vm616_vm2, %v636_v25  ;;  %649 = vst.msk [vmem:[%s1228_s6 + $0x38] sm:$0xff] %vm616_vm2, %v640_v26 }
 0x15b PF: > { %s18_s14 = sadd.s32 1, %s961_s14   ;;  %s1300_s9 = smov %s945_s10 }
 0x15c   : > { %p15_p9 = scmp.ge.s32.totalorder %s18_s14, 4   ;;  %s1301_s10 = smov %s949_s11 }
 0x15d   : > { %s1302_s11 = smov %s1031_s21  ;;  %s1303_s12 = smov %s957_s13 }
 0x15e   : > { %s1304_s13 = smov %s1306_s16  ;;  %17 = sbr.rel (!%p15_p9) target bundleno = 6 (0x6), region = 85 }
 0x165   :  { %671 = vsyncpa [#allocation3], 1 }
 0x166   :  { %673 = vsyncpa [#allocation3 + $0x1], 1 }
 0x167   :  { %674 = vsyncpa [#allocation5], 1 }
 0x168   :  { %676 = vsyncpa [#allocation5 + $0x1], 1 }

</bundles_post_ra>
